<compile_context>
chip_gen: v7x
topology: tpu7x:2x2x1
jax: 0.10.0
libtpu: 0.0.40
codegen_flags: <defaults>
</compile_context>

<pallas_src>
import numpy as np
import jax
import jax.numpy as jnp
from jax import lax
from jax.experimental import pallas as pl
from jax.experimental.pallas import tpu as pltpu


def _round_up(x, m):
    return ((x + m - 1) // m) * m


def _pick_tile(n, candidates):
    for c in candidates:
        if n % c == 0:
            return c
    return n


# ----------------------------------------------------------------------------
# Graph preparation (done ONCE per graph, outside the forward pass):
# pad the normalized adjacency to a 256-multiple and store it directly in bf16.
# ----------------------------------------------------------------------------
def pad_norm_adj_bf16(adj):
    N = adj.shape[0]
    Np = _round_up(N, 256)
    adj_bf = jnp.zeros((Np, Np), jnp.bfloat16).at[:N, :N].set(adj.astype(jnp.bfloat16))
    return adj_bf, Np


# ----------------------------------------------------------------------------
# Kernel 1: one propagation layer + fused running-sum update
#   out_bf16 = A @ e                    (bf16 MXU inputs, f32 accumulation)
#   sum_out  = (sum_in + A @ e) * scale (scale = 1/(L+1) on the last layer -> mean)
# The reduction accumulates directly into the VMEM-resident f32 sum output block
# (no scratch accumulator); the layer output is recovered as sum - sum_in at finalize.
# sum_out aliases sum_in in place.
# ----------------------------------------------------------------------------
def spmm_accum(adj_bf16, e_bf16, sum_in_f32, *, scale, tm, tk):
    Np, D = sum_in_f32.shape
    assert adj_bf16.shape == (Np, Np) and e_bf16.shape == (Np, D)
    assert Np % tm == 0 and Np % tk == 0

    def kernel(a_ref, e_ref, sumin_ref, out_ref, sum_ref):
        k = pl.program_id(1)

        @pl.when(k == 0)
        def _init():
            sum_ref[...] = sumin_ref[...]

        sum_ref[...] += jnp.dot(a_ref[...], e_ref[...],
                                preferred_element_type=jnp.float32)

        @pl.when(k == pl.num_programs(1) - 1)
        def _finalize():
            out_ref[...] = (sum_ref[...] - sumin_ref[...]).astype(out_ref.dtype)
            if scale != 1.0:
                sum_ref[...] = sum_ref[...] * scale

    grid = (Np // tm, Np // tk)
    return pl.pallas_call(
        kernel,
        out_shape=(
            jax.ShapeDtypeStruct((Np, D), jnp.bfloat16),   # A @ e  (next layer's input)
            jax.ShapeDtypeStruct((Np, D), jnp.float32),    # updated running sum (or mean)
        ),
        grid=grid,
        in_specs=[
            pl.BlockSpec((tm, tk), lambda i, k: (i, k)),   # A row/col tile (streamed)
            pl.BlockSpec((tk, D), lambda i, k: (k, 0)),    # e K-tile
            pl.BlockSpec((tm, D), lambda i, k: (i, 0)),    # running-sum row tile (resident)
        ],
        out_specs=(
            pl.BlockSpec((tm, D), lambda i, k: (i, 0)),
            pl.BlockSpec((tm, D), lambda i, k: (i, 0)),
        ),
        input_output_aliases={2: 1},                       # sum_in -> sum_out in place
        compiler_params=pltpu.CompilerParams(
            dimension_semantics=("parallel", "arbitrary"),
            vmem_limit_bytes=48 * 1024 * 1024),
    )(adj_bf16, e_bf16, sum_in_f32)


# ----------------------------------------------------------------------------
# Kernel 2: h = F.normalize(text_feat @ W^T + b, p=2, dim=-1)
# ----------------------------------------------------------------------------
def text_transform_normalize(text_feat, w, b):
    n_items, T = text_feat.shape
    D = w.shape[0]                      # nn.Linear weight is (out_features, in_features)

    Tp = _round_up(T, 128)
    Dp = _round_up(D, 128)
    # row tile scales with n_items (W / bias stay resident; only x and h tiles grow)
    tile = min(512, _round_up(max(n_items, 8), 8))
    Mp = _round_up(n_items, tile)

    x_p = jnp.zeros((Mp, Tp), jnp.bfloat16).at[:n_items, :T].set(
        text_feat.astype(jnp.bfloat16))
    w_p = jnp.zeros((Tp, Dp), jnp.bfloat16).at[:T, :D].set(w.T.astype(jnp.bfloat16))
    b_p = jnp.zeros((1, Dp), jnp.float32).at[0, :D].set(b.astype(jnp.float32))

    def kernel(x_ref, w_ref, b_ref, h_ref):
        y = jnp.dot(x_ref[...], w_ref[...],
                    preferred_element_type=jnp.float32) + b_ref[...]
        ss = jnp.sum(y * y, axis=-1, keepdims=True)
        # max(norm, 1e-12) of F.normalize <=> max(sumsq, 1e-24); rsqrt runs on the EUP slot
        inv = lax.rsqrt(jnp.maximum(ss, 1e-24))
        h_ref[...] = (y * inv).astype(h_ref.dtype)

    h_p = pl.pallas_call(
        kernel,
        out_shape=jax.ShapeDtypeStruct((Mp, Dp), jnp.float32),
        grid=(Mp // tile,),
        in_specs=[
            pl.BlockSpec((tile, Tp), lambda i: (i, 0)),
            pl.BlockSpec((Tp, Dp), lambda i: (0, 0)),
            pl.BlockSpec((1, Dp), lambda i: (0, 0)),
        ],
        out_specs=pl.BlockSpec((tile, Dp), lambda i: (i, 0)),
        compiler_params=pltpu.CompilerParams(
            dimension_semantics=("parallel",),
            vmem_limit_bytes=48 * 1024 * 1024),
    )(x_p, w_p, b_p)
    if Mp == n_items and Dp == D:
        return h_p                                          # no-op slice avoided
    return h_p[:n_items, :D]


# ----------------------------------------------------------------------------
# Model.forward equivalent (glue in plain JAX, hot paths in Pallas kernels).
# adj_bf is the padded bf16 adjacency (prepared ONCE via pad_norm_adj_bf16).
# ----------------------------------------------------------------------------
def model_forward(adj_bf, n_users, n_items, user_emb, item_emb,
                  text_feat, text_w, text_b, num_layers):
    assert num_layers >= 1
    D = user_emb.shape[1]
    N = n_users + n_items
    Np = adj_bf.shape[0]
    assert Np >= N and Np % 256 == 0

    # pick the largest aligned tiles dividing Np (v6e/v7x friendly: multiples of 256)
    tm = _pick_tile(Np, (1024, 512, 256))
    tk = _pick_tile(Np, (2048, 1024, 512, 256))

    # padded rows of e0 and padded rows/cols of A are zero, so they never pollute real rows
    e0 = jnp.concatenate([user_emb, item_emb], axis=0).astype(jnp.float32)
    e0_pad = jnp.zeros((Np, D), jnp.float32).at[:N].set(e0)
    cur_bf = e0_pad.astype(jnp.bfloat16)   # layer input for the MXU (bf16)
    run_sum = e0_pad                       # f32 running sum of layer embeddings

    e1_bf = None
    for l in range(num_layers):            # short static loop -> Python-unrolled
        scale = (1.0 / float(num_layers + 1)) if l == num_layers - 1 else 1.0
        cur_bf, run_sum = spmm_accum(adj_bf, cur_bf, run_sum,
                                     scale=scale, tm=tm, tk=tk)
        if l == 0:
            e1_bf = cur_bf
    mean_pad = run_sum                      # already divided by (L+1) in the last call

    mean_emb = mean_pad[:N]
    e1 = e1_bf[:N].astype(jnp.float32)

    u_embedding = mean_emb[:n_users]
    i_embedding = mean_emb[n_users:]
    layer_u_embedding0, layer_i_embedding0 = e0[:n_users], e0[n_users:]
    layer_u_embedding1, layer_i_embedding1 = e1[:n_users], e1[n_users:]

    # items=None path: h over all items (use_text=True)
    h = text_transform_normalize(text_feat, text_w, text_b)

    return (u_embedding, i_embedding, h,
            layer_u_embedding0, layer_u_embedding1,
            layer_i_embedding0, layer_i_embedding1)


# ----------------------------------------------------------------------------
# Deterministic setup helpers
# ----------------------------------------------------------------------------
def xavier_normal(key, shape):
    fan_out, fan_in = shape[0], shape[1]
    std = float(np.sqrt(2.0 / (fan_in + fan_out)))
    return jax.random.normal(key, shape, dtype=jnp.float32) * std


def build_norm_adj(users, items, n_users, n_items):
    """Dense replica of get_norm_adj_mat: D^-1/2 A D^-1/2."""
    N = n_users + n_items
    A = np.zeros((N, N), dtype=np.float32)
    u = np.asarray(users)
    it = np.asarray(items) + n_users
    A[u, it] = 1.0
    A[it, u] = 1.0
    deg = A.sum(axis=1) + 1e-7
    d_inv_sqrt = np.power(deg, -0.5)
    L = (A * d_inv_sqrt[:, None]) * d_inv_sqrt[None, :]
    return jnp.asarray(L, dtype=jnp.float32)


if __name__ == "__main__":
    n_users, n_items = 32, 64
    dim = 128           # embedding_dim
    text_dim = 256      # text feature width
    num_layers = 2      # args.layers

    key = jax.random.PRNGKey(0)
    k_u, k_i, k_w, k_b, k_t, k_e = jax.random.split(key, 6)

    # nn.Embedding / nn.Linear weights, xavier_normal as in init_weights
    user_emb = xavier_normal(k_u, (n_users, dim))
    item_emb = xavier_normal(k_i, (n_items, dim))
    text_w = xavier_normal(k_w, (dim, text_dim))                       # (out, in)
    text_b = jax.random.uniform(k_b, (dim,), dtype=jnp.float32,
                                minval=-0.05, maxval=0.05)
    text_feat = jax.random.normal(k_t, (n_items, text_dim), dtype=jnp.float32)

    # deterministic random user-item interaction edges
    n_edges = 256
    eu = np.asarray(jax.random.randint(k_e, (n_edges,), 0, n_users))
    ei = np.asarray(jax.random.randint(jax.random.fold_in(k_e, 1),
                                       (n_edges,), 0, n_items))
    adj = build_norm_adj(eu, ei, n_users, n_items)

    # graph preprocessing done once (constant across forward calls)
    adj_bf, _ = pad_norm_adj_bf16(adj)
    adj_bf = jax.block_until_ready(adj_bf)

    outs = model_forward(adj_bf, n_users, n_items, user_emb, item_emb,
                         text_feat, text_w, text_b, num_layers)
    outs = jax.block_until_ready(outs)

    (u_e, i_e, h, lu0, lu1, li0, li1) = outs
    assert u_e.shape == (n_users, dim) and i_e.shape == (n_items, dim)
    assert h.shape == (n_items, dim)
    assert lu0.shape == lu1.shape == (n_users, dim)
    assert li0.shape == li1.shape == (n_items, dim)
    assert all(bool(jnp.all(jnp.isfinite(o))) for o in outs)
    # h rows should be unit-norm (F.normalize semantics)
    hn = jnp.sqrt(jnp.sum(h * h, axis=-1))
    assert bool(jnp.all(jnp.abs(hn - 1.0) < 1e-2))

    print("KERNEL_OK")
</pallas_src>

<mosaic_0001>
module attributes {stable_mosaic.version = 11 : i64} {
  func.func @kernel(%arg0: i32, %arg1: i32, %arg2: memref<256x256xbf16, #tpu.memory_space<vmem>>, %arg3: memref<256x128xbf16, #tpu.memory_space<vmem>>, %arg4: memref<256x128xf32, #tpu.memory_space<vmem>>, %arg5: memref<256x128xbf16, #tpu.memory_space<vmem>>, %arg6: memref<256x128xf32, #tpu.memory_space<vmem>>) attributes {dimension_semantics = [#tpu.dimension_semantics<parallel>, #tpu.dimension_semantics<arbitrary>], iteration_bounds = array<i64: 1, 1>, scalar_prefetch = 0 : i64, scratch_operands = 0 : i64, tpu.core_type = #tpu.core_type<tc>, window_params = [{transform_indices = @transform_0, window_bounds = array<i64: 256, 256>}, {transform_indices = @transform_1, window_bounds = array<i64: 256, 128>}, {transform_indices = @transform_2, window_bounds = array<i64: 256, 128>}, {transform_indices = @transform_3, window_bounds = array<i64: 256, 128>}, {transform_indices = @transform_4, window_bounds = array<i64: 256, 128>}]} {
    %c0_i32 = arith.constant 0 : i32
    %0 = arith.cmpi eq, %arg1, %c0_i32 : i32
    %1 = arith.extui %0 : i1 to i32
    %c0_i32_0 = arith.constant 0 : i32
    %2 = arith.cmpi ne, %1, %c0_i32_0 : i32
    scf.if %2 {
      %c0_10 = arith.constant 0 : index
      %c0_11 = arith.constant 0 : index
      %12 = vector.load %arg4[%c0_10, %c0_11] : memref<256x128xf32, #tpu.memory_space<vmem>>, vector<256x128xf32>
      %c0_12 = arith.constant 0 : index
      %c0_13 = arith.constant 0 : index
      %13 = vector.load %arg6[%c0_12, %c0_13] : memref<256x128xf32, #tpu.memory_space<vmem>>, vector<256x128xf32>
      tpu.vector_store %arg6[%c0_12, %c0_13], %12 {strides = array<i32>} : memref<256x128xf32, #tpu.memory_space<vmem>>, vector<256x128xf32>,
    } else {
    }
    %c0 = arith.constant 0 : index
    %c0_1 = arith.constant 0 : index
    %3 = vector.load %arg6[%c0, %c0_1] : memref<256x128xf32, #tpu.memory_space<vmem>>, vector<256x128xf32>
    %c0_2 = arith.constant 0 : index
    %c0_3 = arith.constant 0 : index
    %4 = vector.load %arg2[%c0_2, %c0_3] : memref<256x256xbf16, #tpu.memory_space<vmem>>, vector<256x256xbf16>
    %c0_4 = arith.constant 0 : index
    %c0_5 = arith.constant 0 : index
    %5 = vector.load %arg3[%c0_4, %c0_5] : memref<256x128xbf16, #tpu.memory_space<vmem>>, vector<256x128xbf16>
    %cst = arith.constant dense<0.000000e+00> : vector<256x128xf32>
    %6 = tpu.matmul %4, %5, %cst {dimension_numbers = #tpu.dot_dimension_numbers<[1], [0], [0], [1], [0, 0, 1, 1], [], []>} : vector<256x256xbf16>, vector<256x128xbf16>, vector<256x128xf32> -> vector<256x128xf32>
    %7 = arith.addf %3, %6 : vector<256x128xf32>
    %c0_6 = arith.constant 0 : index
    %c0_7 = arith.constant 0 : index
    %8 = vector.load %arg6[%c0_6, %c0_7] : memref<256x128xf32, #tpu.memory_space<vmem>>, vector<256x128xf32>
    tpu.vector_store %arg6[%c0_6, %c0_7], %7 {strides = array<i32>} : memref<256x128xf32, #tpu.memory_space<vmem>>, vector<256x128xf32>,
    %c0_i32_8 = arith.constant 0 : i32
    %9 = arith.cmpi eq, %arg1, %c0_i32_8 : i32
    %10 = arith.extui %9 : i1 to i32
    %c0_i32_9 = arith.constant 0 : i32
    %11 = arith.cmpi ne, %10, %c0_i32_9 : i32
    scf.if %11 {
      %c0_10 = arith.constant 0 : index
      %c0_11 = arith.constant 0 : index
      %12 = vector.load %arg6[%c0_10, %c0_11] : memref<256x128xf32, #tpu.memory_space<vmem>>, vector<256x128xf32>
      %c0_12 = arith.constant 0 : index
      %c0_13 = arith.constant 0 : index
      %13 = vector.load %arg4[%c0_12, %c0_13] : memref<256x128xf32, #tpu.memory_space<vmem>>, vector<256x128xf32>
      %14 = arith.subf %12, %13 : vector<256x128xf32>
      %15 = arith.truncf %14 : vector<256x128xf32> to vector<256x128xbf16>
      %c0_14 = arith.constant 0 : index
      %c0_15 = arith.constant 0 : index
      %16 = vector.load %arg5[%c0_14, %c0_15] : memref<256x128xbf16, #tpu.memory_space<vmem>>, vector<256x128xbf16>
      tpu.vector_store %arg5[%c0_14, %c0_15], %15 {strides = array<i32>} : memref<256x128xbf16, #tpu.memory_space<vmem>>, vector<256x128xbf16>,
    } else {
    }
    return
  }
  func.func @transform_0(%arg0: i32, %arg1: i32) -> (i32, i32) {
    %c0_i32 = arith.constant 0 : i32
    return %arg0, %arg1 : i32, i32
  }
  func.func @transform_1(%arg0: i32, %arg1: i32) -> (i32, i32) {
    %c0_i32 = arith.constant 0 : i32
    %c0_i32_0 = arith.constant 0 : i32
    return %arg1, %c0_i32 : i32, i32
  }
  func.func @transform_2(%arg0: i32, %arg1: i32) -> (i32, i32) {
    %c0_i32 = arith.constant 0 : i32
    %c0_i32_0 = arith.constant 0 : i32
    return %arg0, %c0_i32 : i32, i32
  }
  func.func @transform_3(%arg0: i32, %arg1: i32) -> (i32, i32) {
    %c0_i32 = arith.constant 0 : i32
    %c0_i32_0 = arith.constant 0 : i32
    return %arg0, %c0_i32 : i32, i32
  }
  func.func @transform_4(%arg0: i32, %arg1: i32) -> (i32, i32) {
    %c0_i32 = arith.constant 0 : i32
    %c0_i32_0 = arith.constant 0 : i32
    return %arg0, %c0_i32 : i32, i32
  }
}

</mosaic_0001>

<bundles_post_ra>
// kernel: tpu_custom_call.1
= control target key start
LH: loop header
LB: loop body
LE: loop exit
PB: predicated region body
PF: predicated region fallthrough
CT: control target
= control target key end

     0   :  { %10 = vsyncpa [#allocation3], 0  ;;  %s1673_s0 = inlined_call_operand.vmem [shape: bf16[256,256], index: 0, kind: input, shape index: {}]   ;;  %s1674_s1 = inlined_call_operand.vmem [shape: bf16[256,128], index: 1, kind: input, shape index: {}]   ;;  %s1675_s2 = inlined_call_operand.hbm [shape: f32[256,128], index: 2, kind: input, shape index: {}, may-alias: {2,4}]   ;;  %s1676_s3 = inlined_call_operand.hbm [shape: bf16[256,128], index: 3, kind: output, shape index: {0}]   ;;  %s1677_s4 = inlined_call_operand.hbm [shape: f32[256,128], index: 4, kind: output, shape index: {1}, may-alias: {2,4}]  }
   0x1   :  { %11 = vsyncpa [#allocation4], 0 }
   0x2   :  { %12 = vsyncpa [#allocation7], 0  ;;  %s1448_s15 = smov [#allocation2]   ;;  %s1376_s19 = scalar_lea.hbm %s1675_s2, 4096 }
   0x3   :  { %s22_s16 = sshll.u32 %s1448_s15, 4  ;;  %p1377_p0 = scmp.ne.s32.totalorder %s1675_s2, %s1376_s19  ;;  %s23_s16 = int_to_ptr.vmem [resolvable:$true] %s22_s16 }
   0x4   :  { %p1380_p1 = scmp.lt.u32.totalorder %s1376_s19, %s1675_s2 }
   0x6   :  { %p1382_p2 = pnand %p1380_p1, %p1377_p0 }
   0x8   :  { %1385 = shalt.err (!%p1382_p2)
}
   0x9   :  { %s1386_s24 = scalar_lea.vmem %s23_s16, 4096  ;;  %p1391_p4 = scmp.lt.s32.totalorder %s23_s16, %s23_s16 }
   0xa   :  { %p1387_p3 = scmp.ne.s32.totalorder %s23_s16, %s1386_s24  ;;  %p1392_p5 = scmp.lt.s32.totalorder %s1386_s24, %s1386_s24 }
   0xc   :  { %p1393_p6 = por %p1392_p5, %p1391_p4 }
   0xe   :  { %p1394_p7 = pnand %p1393_p6, %p1387_p3 }
  0x10   :  { %1397 = shalt.err (!%p1394_p7)
}
  0x11   :  { %s1449_s25 = smov 128   ;;  %s1450_s26 = smov 8  }
  0x12   :  { %28 = dma.hbm_to_vmem [thread:$0]  %s1675_s2, 4096, %s23_s16, [#allocation3], %s1449_s25, %s1449_s25, %s1450_s26  }
  0x13   :  { %1442 = dma.done.wait [#allocation3], 4096  }
  0x14   :  { %1443 = vsyncadd [#allocation3], 4294963200  ;;  %v1312_v0 = vld [vmem:[%s1674_s1 + $0x40] sm:$0xff]   ;;  %v1314_v2 = vld [vmem:[%s1674_s1 + $0x48] sm:$0xff]   ;;  %s1452_s21 = smov [#allocation5]  }
  0x15   :  { %v1313_v1 = vld [vmem:[%s1674_s1] sm:$0xff]   ;;  %1177 = vmatprep.subr.bf16.mxu0 %v1312_v0  ;;  %1289 = vmatprep.subr.bf16.mxu1 %v1312_v0  ;;  %v1315_v3 = vld [vmem:[%s1674_s1 + $0x8] sm:$0xff]   ;;  %v1316_v4 = vld [vmem:[%s1674_s1 + $0x50] sm:$0xff]   ;;  %s942_s22 = sshll.u32 %s1452_s21, 4  ;;  %s1639_s22 = int_to_ptr.vmem [resolvable:$true] %s942_s22 }
  0x16   :  { %1178 = vmatpush3.bf16.msra.mxu0 %v1313_v1  ;;  %1297 = vmatpush3.bf16.msra.mxu1 %v1313_v1  ;;  %v1317_v5 = vld [vmem:[%s1674_s1 + $0x10] sm:$0xff]   ;;  %v1318_v6 = vld [vmem:[%s1674_s1 + $0x58] sm:$0xff]   ;;  %v1320_v8 = vld [vmem:[%s1674_s1 + $0x60] sm:$0xff]  }
  0x17   :  { %1179 = vmatprep.subr.bf16.mxu0 %v1314_v2  ;;  %1290 = vmatprep.subr.bf16.mxu1 %v1314_v2  ;;  %v1319_v7 = vld [vmem:[%s1674_s1 + $0x18] sm:$0xff]   ;;  %v1321_v9 = vld [vmem:[%s1674_s1 + $0x20] sm:$0xff]   ;;  %v1322_v10 = vld [vmem:[%s1674_s1 + $0x68] sm:$0xff]  }
  0x18   :  { %v1330_v11 = vld [vmem:[%s1673_s0 + $0x4] ss:$8 sps:$4 sm:$0xff]   ;;  %v1324_v14 = vld [vmem:[%s1674_s1 + $0x70] sm:$0xff]   ;;  %v1326_v16 = vld [vmem:[%s1674_s1 + $0x78] sm:$0xff]  }
  0x19   :  { %v1333_v12 = vld [vmem:[%s1673_s0 + $0x84] ss:$8 sps:$4 sm:$0xff]   ;;  %485 = vmatprep.mubr.bf16.mxu0 %v1330_v11  ;;  %v1325_v15 = vld [vmem:[%s1674_s1 + $0x30] sm:$0xff]   ;;  %v1327_v17 = vld [vmem:[%s1674_s1 + $0x38] sm:$0xff]  }
  0x1a   :  { %1180 = vmatpush3.bf16.msra.mxu0 %v1315_v3  ;;  %1298 = vmatpush3.bf16.msra.mxu1 %v1315_v3  ;;  %v1323_v13 = vld [vmem:[%s1674_s1 + $0x28] sm:$0xff]   ;;  %v1334_v20 = vld [vmem:[%s1673_s0 + $0x14] ss:$8 sps:$4 sm:$0xff]   ;;  %v1338_v22 = vld [vmem:[%s1673_s0 + $0x10] ss:$8 sps:$4 sm:$0xff]  }
  0x1b   :  { %1181 = vmatprep.subr.bf16.mxu0 %v1316_v4  ;;  %1291 = vmatprep.subr.bf16.mxu1 %v1316_v4  ;;  %v1328_v18 = vld [vmem:[%s1673_s0] ss:$8 sps:$4 sm:$0xff]   ;;  %v1336_v21 = vld [vmem:[%s1673_s0 + $0x94] ss:$8 sps:$4 sm:$0xff]   ;;  %v1339_v23 = vld [vmem:[%s1673_s0 + $0x90] ss:$8 sps:$4 sm:$0xff]  }
  0x1c   :  { %549 = vmatprep.mubr.bf16.mxu1 %v1333_v12  ;;  %v1331_v19 = vld [vmem:[%s1673_s0 + $0x80] ss:$8 sps:$4 sm:$0xff]   ;;  %v1340_v24 = vld [vmem:[%s1673_s0 + $0x24] ss:$8 sps:$4 sm:$0xff]   ;;  %v1346_v28 = vld [vmem:[%s1673_s0 + $0x34] ss:$8 sps:$4 sm:$0xff]  }
  0x1d   :  { %v1342_v25 = vld [vmem:[%s1673_s0 + $0xa4] ss:$8 sps:$4 sm:$0xff]   ;;  %v1344_v26 = vld [vmem:[%s1673_s0 + $0x20] ss:$8 sps:$4 sm:$0xff]   ;;  %v1348_v29 = vld [vmem:[%s1673_s0 + $0xb4] ss:$8 sps:$4 sm:$0xff]  }
  0x1e   :  { %1182 = vmatpush3.bf16.msra.mxu0 %v1317_v5  ;;  %1299 = vmatpush3.bf16.msra.mxu1 %v1317_v5  ;;  %v1345_v27 = vld [vmem:[%s1673_s0 + $0xa0] ss:$8 sps:$4 sm:$0xff]   ;;  %v1350_v30 = vld [vmem:[%s1673_s0 + $0x30] ss:$8 sps:$4 sm:$0xff]   ;;  %v1352_v32 = vld [vmem:[%s1673_s0 + $0x44] ss:$8 sps:$4 sm:$0xff]  }
  0x1f   :  { %1183 = vmatprep.subr.bf16.mxu0 %v1318_v6  ;;  %1292 = vmatprep.subr.bf16.mxu1 %v1318_v6  ;;  %v1351_v31 = vld [vmem:[%s1673_s0 + $0xb0] ss:$8 sps:$4 sm:$0xff]   ;;  %v1354_v33 = vld [vmem:[%s1673_s0 + $0xc4] ss:$8 sps:$4 sm:$0xff]   ;;  %v1356_v34 = vld [vmem:[%s1673_s0 + $0x40] ss:$8 sps:$4 sm:$0xff]  }
  0x20   :  { %v1357_v35 = vld [vmem:[%s1673_s0 + $0xc0] ss:$8 sps:$4 sm:$0xff]   ;;  %v1358_v36 = vld [vmem:[%s1673_s0 + $0x54] ss:$8 sps:$4 sm:$0xff]   ;;  %v1362_v38 = vld [vmem:[%s1673_s0 + $0x50] ss:$8 sps:$4 sm:$0xff]  }
  0x21   :  { %v1360_v37 = vld [vmem:[%s1673_s0 + $0xd4] ss:$8 sps:$4 sm:$0xff]   ;;  %v1363_v39 = vld [vmem:[%s1673_s0 + $0xd0] ss:$8 sps:$4 sm:$0xff]   ;;  %v1364_v40 = vld [vmem:[%s1673_s0 + $0x64] ss:$8 sps:$4 sm:$0xff]  }
  0x22   :  { %1184 = vmatpush3.bf16.msra.mxu0 %v1319_v7  ;;  %1300 = vmatpush3.bf16.msra.mxu1 %v1319_v7  ;;  %v1366_v41 = vld [vmem:[%s1673_s0 + $0xe4] ss:$8 sps:$4 sm:$0xff]   ;;  %v1368_v42 = vld [vmem:[%s1673_s0 + $0x60] ss:$8 sps:$4 sm:$0xff]   ;;  %v1370_v44 = vld [vmem:[%s1673_s0 + $0x74] ss:$8 sps:$4 sm:$0xff]  }
  0x23   :  { %1185 = vmatprep.subr.bf16.mxu0 %v1320_v8  ;;  %1293 = vmatprep.subr.bf16.mxu1 %v1320_v8  ;;  %v1369_v43 = vld [vmem:[%s1673_s0 + $0xe0] ss:$8 sps:$4 sm:$0xff]   ;;  %v1372_v45 = vld [vmem:[%s1673_s0 + $0xf4] ss:$8 sps:$4 sm:$0xff]   ;;  %v1374_v46 = vld [vmem:[%s1673_s0 + $0x70] ss:$8 sps:$4 sm:$0xff]  }
  0x24   :  { %v1375_v47 = vld [vmem:[%s1673_s0 + $0xf0] ss:$8 sps:$4 sm:$0xff]   ;;  %v37_v50 = vld [vmem:[#allocation2] sm:$0xff]  ;;  %v38_v58 = vld [vmem:[#allocation2 + $0x8] sm:$0xff]  ;;  %s1451_s0 = smov [#allocation6]  }
  0x25   :  { %v53_v52 = vld [vmem:[#allocation2 + $0x80] sm:$0xff]  ;;  %v54_v60 = vld [vmem:[#allocation2 + $0x88] sm:$0xff]  ;;  %v55_v12 = vld [vmem:[#allocation2 + $0x90] sm:$0xff]  ;;  %s954_s1 = sshll.u32 %s1451_s0, 4  ;;  %s955_s1 = int_to_ptr.vmem [resolvable:$true] %s954_s1 }
  0x26   :  { %1186 = vmatpush3.bf16.msra.mxu0 %v1321_v9  ;;  %1301 = vmatpush3.bf16.msra.mxu1 %v1321_v9  ;;  %s1398_s23 = scalar_lea.vmem %s955_s1, 4096  ;;  %p1403_p9 = scmp.lt.s32.totalorder %s955_s1, %s955_s1 }
  0x27   :  { %1187 = vmatprep.subr.bf16.mxu0 %v1322_v10  ;;  %1294 = vmatprep.subr.bf16.mxu1 %v1322_v10  ;;  %v39_v10 = vld [vmem:[#allocation2 + $0x10] sm:$0xff]  ;;  %p1399_p8 = scmp.ne.s32.totalorder %s955_s1, %s1398_s23  ;;  %p1404_p10 = scmp.lt.s32.totalorder %s1398_s23, %s1398_s23 }
  0x29   :  { %p1405_p11 = por %p1404_p10, %p1403_p9 }
  0x2a   :  { %1188 = vmatpush3.bf16.msra.mxu0 %v1323_v13  ;;  %1302 = vmatpush3.bf16.msra.mxu1 %v1323_v13 }
  0x2b   :  { %1189 = vmatprep.subr.bf16.mxu0 %v1324_v14  ;;  %1295 = vmatprep.subr.bf16.mxu1 %v1324_v14  ;;  %p1406_p12 = pnand %p1405_p11, %p1399_p8 }
  0x2e   :  { %1190 = vmatpush3.bf16.msra.mxu0 %v1325_v15  ;;  %1303 = vmatpush3.bf16.msra.mxu1 %v1325_v15 }
  0x2f   :  { %1191 = vmatprep.subr.bf16.mxu0 %v1326_v16  ;;  %1296 = vmatprep.subr.bf16.mxu1 %v1326_v16 }
  0x32   :  { %1192 = vmatpush3.bf16.msra.mxu0 %v1327_v17  ;;  %1304 = vmatpush3.bf16.msra.mxu1 %v1327_v17 }
  0x35   :  { %486 = vmatmul.mubr.bf16.vlgmr.msra.gmra.mrb[0].mxu0 %v1328_v18  ;;  %550 = vmatmul.mubr.bf16.vlgmr.msra.gmra.mrb[0].mxu1 %v1331_v19 }
  0x36   :  { %493 = vmatprep.mubr.bf16.mxu0 %v1334_v20  ;;  %557 = vmatprep.mubr.bf16.mxu1 %v1336_v21  ;;  %v40_v20 = vld [vmem:[#allocation2 + $0x18] sm:$0xff] }
  0x3d   :  { %494 = vmatmul.mubr.bf16.gmra.mrb[4].mxu0 %v1338_v22  ;;  %558 = vmatmul.mubr.bf16.gmra.mrb[4].mxu1 %v1339_v23  ;;  %v56_v22 = vld [vmem:[#allocation2 + $0x98] sm:$0xff] }
  0x3e   :  { %501 = vmatprep.mubr.bf16.mxu0 %v1340_v24  ;;  %565 = vmatprep.mubr.bf16.mxu1 %v1342_v25 }
  0x45   :  { %502 = vmatmul.mubr.bf16.gmra.mrb[8].mxu0 %v1344_v26  ;;  %566 = vmatmul.mubr.bf16.gmra.mrb[8].mxu1 %v1345_v27 }
  0x46   :  { %509 = vmatprep.mubr.bf16.mxu0 %v1346_v28  ;;  %573 = vmatprep.mubr.bf16.mxu1 %v1348_v29 }
  0x4d   :  { %510 = vmatmul.mubr.bf16.gmra.mrb[12].mxu0 %v1350_v30  ;;  %574 = vmatmul.mubr.bf16.gmra.mrb[12].mxu1 %v1351_v31 }
  0x4e   :  { %517 = vmatprep.mubr.bf16.mxu0 %v1352_v32  ;;  %581 = vmatprep.mubr.bf16.mxu1 %v1354_v33 }
  0x55   :  { %518 = vmatmul.mubr.bf16.gmra.mrb[16].mxu0 %v1356_v34  ;;  %582 = vmatmul.mubr.bf16.gmra.mrb[16].mxu1 %v1357_v35 }
  0x56   :  { %525 = vmatprep.mubr.bf16.mxu0 %v1358_v36  ;;  %589 = vmatprep.mubr.bf16.mxu1 %v1360_v37  ;;  %v41_v36 = vld [vmem:[#allocation2 + $0x20] sm:$0xff] }
  0x5d   :  { %526 = vmatmul.mubr.bf16.gmra.mrb[20].mxu0 %v1362_v38  ;;  %590 = vmatmul.mubr.bf16.gmra.mrb[20].mxu1 %v1363_v39  ;;  %v57_v38 = vld [vmem:[#allocation2 + $0xa0] sm:$0xff] }
  0x5e   :  { %533 = vmatprep.mubr.bf16.mxu0 %v1364_v40  ;;  %597 = vmatprep.mubr.bf16.mxu1 %v1366_v41 }
  0x65   :  { %534 = vmatmul.mubr.bf16.gmra.mrb[24].mxu0 %v1368_v42  ;;  %598 = vmatmul.mubr.bf16.gmra.mrb[24].mxu1 %v1369_v43 }
  0x66   :  { %541 = vmatprep.mubr.bf16.mxu0 %v1370_v44  ;;  %605 = vmatprep.mubr.bf16.mxu1 %v1372_v45 }
  0x6d   :  { %542 = vmatmul.mubr.bf16.gmra.mrb[28].mxu0 %v1374_v46  ;;  %606 = vmatmul.mubr.bf16.gmra.mrb[28].mxu1 %v1375_v47  ;;  %v42_v46 = vld [vmem:[#allocation2 + $0x28] sm:$0xff] }
 0x108   :  { %v1193_v48 = vpop.f32.mrb[0].mxu0  ;;  %v1241_v49 = vpop.f32.mrb[0].mxu1 }
 0x109   :  { %v1194_v51 = vpop.f32.mrb[1].mxu0  ;;  %v1242_v53 = vpop.f32.mrb[1].mxu1 }
 0x10a   :  { %v1195_v54 = vadd.f32 %v1194_v51, %v1193_v48  ;;  %v1243_v55 = vadd.f32 %v1242_v53, %v1241_v49  ;;  %v1196_v56 = vpop.f32.mrb[2].mxu0  ;;  %v1244_v57 = vpop.f32.mrb[2].mxu1  ;;  %v58_v48 = vld [vmem:[#allocation2 + $0xa8] sm:$0xff] }
 0x10b   :  { %v1197_v59 = vpop.f32.mrb[3].mxu0  ;;  %v1245_v61 = vpop.f32.mrb[3].mxu1 }
 0x10c   :  { %v614_v62 = vadd.f32 %v1195_v54, %v37_v50  ;;  %v630_v63 = vadd.f32 %v1243_v55, %v53_v52  ;;  %v1198_v0 = vadd.f32 %v1197_v59, %v1196_v56  ;;  %v1246_v1 = vadd.f32 %v1245_v61, %v1244_v57 }
 0x10e   :  { %646 = vst [vmem:[#allocation6] sm:$0xff] %v614_v62  ;;  %662 = vst [vmem:[#allocation6 + $0x80] sm:$0xff] %v630_v63  ;;  %v615_v2 = vadd.f32 %v1198_v0, %v38_v58  ;;  %v631_v3 = vadd.f32 %v1246_v1, %v54_v60  ;;  %v745_v4 = vsub.f32 %v614_v62, %v37_v50  ;;  %v43_v62 = vld [vmem:[#allocation2 + $0x30] sm:$0xff] }
 0x10f   :  { %v761_v5 = vsub.f32 %v630_v63, %v53_v52  ;;  %v59_v0 = vld [vmem:[#allocation2 + $0xb0] sm:$0xff] }
 0x110   :  { %647 = vst [vmem:[#allocation6 + $0x8] sm:$0xff] %v615_v2  ;;  %v746_v6 = vsub.f32 %v615_v2, %v38_v58  ;;  %663 = vst [vmem:[#allocation6 + $0x88] sm:$0xff] %v631_v3  ;;  %v762_v7 = vsub.f32 %v631_v3, %v54_v60  ;;  %v1199_v8 = vpop.f32.mrb[4].mxu0  ;;  %v1247_v9 = vpop.f32.mrb[4].mxu1 }
 0x111   :  { %v1200_v11 = vpop.f32.mrb[5].mxu0  ;;  %v1248_v13 = vpop.f32.mrb[5].mxu1 }
 0x112   :  { %v1085_v14 = vpack.c.bf16 %v746_v6, %v745_v4  ;;  %v1125_v15 = vpack.c.bf16 %v762_v7, %v761_v5  ;;  %v1201_v16 = vadd.f32 %v1200_v11, %v1199_v8  ;;  %v1249_v17 = vadd.f32 %v1248_v13, %v1247_v9  ;;  %v1202_v18 = vpop.f32.mrb[6].mxu0  ;;  %v1250_v19 = vpop.f32.mrb[6].mxu1  ;;  %v44_v8 = vld [vmem:[#allocation2 + $0x38] sm:$0xff] }
 0x113   :  { %v1203_v21 = vpop.f32.mrb[7].mxu0  ;;  %v1251_v23 = vpop.f32.mrb[7].mxu1 }
 0x114   :  { %1086 = vst [vmem:[#allocation5] sm:$0xff] %v1085_v14   ;;  %1169 = vst [vmem:[#allocation5 + $0x40] sm:$0xff] %v1125_v15   ;;  %v616_v24 = vadd.f32 %v1201_v16, %v39_v10  ;;  %v632_v25 = vadd.f32 %v1249_v17, %v55_v12  ;;  %v1204_v26 = vadd.f32 %v1203_v21, %v1202_v18 }
 0x115   :  { %v1252_v27 = vadd.f32 %v1251_v23, %v1250_v19 }
 0x116   :  { %648 = vst [vmem:[#allocation6 + $0x10] sm:$0xff] %v616_v24  ;;  %664 = vst [vmem:[#allocation6 + $0x90] sm:$0xff] %v632_v25  ;;  %v617_v28 = vadd.f32 %v1204_v26, %v40_v20  ;;  %v747_v30 = vsub.f32 %v616_v24, %v39_v10  ;;  %v763_v31 = vsub.f32 %v632_v25, %v55_v12  ;;  %v60_v10 = vld [vmem:[#allocation2 + $0xb8] sm:$0xff]  ;;  %v45_v24 = vld [vmem:[#allocation2 + $0x40] sm:$0xff] }
 0x117   :  { %v633_v29 = vadd.f32 %v1252_v27, %v56_v22  ;;  %v61_v26 = vld [vmem:[#allocation2 + $0xc0] sm:$0xff] }
 0x118   :  { %649 = vst [vmem:[#allocation6 + $0x18] sm:$0xff] %v617_v28  ;;  %v748_v32 = vsub.f32 %v617_v28, %v40_v20  ;;  %v1205_v34 = vpop.f32.mrb[8].mxu0  ;;  %v1253_v35 = vpop.f32.mrb[8].mxu1 }
 0x119   :  { %665 = vst [vmem:[#allocation6 + $0x98] sm:$0xff] %v633_v29  ;;  %v764_v33 = vsub.f32 %v633_v29, %v56_v22  ;;  %v1206_v37 = vpop.f32.mrb[9].mxu0  ;;  %v1254_v39 = vpop.f32.mrb[9].mxu1 }
 0x11a   :  { %v1090_v40 = vpack.c.bf16 %v748_v32, %v747_v30  ;;  %v1207_v42 = vadd.f32 %v1206_v37, %v1205_v34  ;;  %v1255_v43 = vadd.f32 %v1254_v39, %v1253_v35  ;;  %v1208_v44 = vpop.f32.mrb[10].mxu0  ;;  %v1256_v45 = vpop.f32.mrb[10].mxu1  ;;  %v46_v34 = vld [vmem:[#allocation2 + $0x48] sm:$0xff] }
 0x11b   :  { %v1130_v41 = vpack.c.bf16 %v764_v33, %v763_v31  ;;  %v1209_v47 = vpop.f32.mrb[11].mxu0  ;;  %v1257_v49 = vpop.f32.mrb[11].mxu1 }
 0x11c   :  { %1162 = vst [vmem:[#allocation5 + $0x8] sm:$0xff] %v1090_v40   ;;  %v618_v50 = vadd.f32 %v1207_v42, %v41_v36  ;;  %v634_v51 = vadd.f32 %v1255_v43, %v57_v38  ;;  %v1210_v52 = vadd.f32 %v1209_v47, %v1208_v44  ;;  %v1258_v53 = vadd.f32 %v1257_v49, %v1256_v45 }
 0x11d   :  { %1170 = vst [vmem:[#allocation5 + $0x48] sm:$0xff] %v1130_v41  }
 0x11e   :  { %650 = vst [vmem:[#allocation6 + $0x20] sm:$0xff] %v618_v50  ;;  %666 = vst [vmem:[#allocation6 + $0xa0] sm:$0xff] %v634_v51  ;;  %v619_v54 = vadd.f32 %v1210_v52, %v42_v46  ;;  %v635_v55 = vadd.f32 %v1258_v53, %v58_v48  ;;  %v749_v56 = vsub.f32 %v618_v50, %v41_v36  ;;  %v62_v36 = vld [vmem:[#allocation2 + $0xc8] sm:$0xff]  ;;  %v47_v50 = vld [vmem:[#allocation2 + $0x50] sm:$0xff] }
 0x11f   :  { %v765_v57 = vsub.f32 %v634_v51, %v57_v38  ;;  %v63_v52 = vld [vmem:[#allocation2 + $0xd0] sm:$0xff] }
 0x120   :  { %651 = vst [vmem:[#allocation6 + $0x28] sm:$0xff] %v619_v54  ;;  %v750_v58 = vsub.f32 %v619_v54, %v42_v46  ;;  %667 = vst [vmem:[#allocation6 + $0xa8] sm:$0xff] %v635_v55  ;;  %v766_v59 = vsub.f32 %v635_v55, %v58_v48  ;;  %v1211_v60 = vpop.f32.mrb[12].mxu0  ;;  %v1259_v61 = vpop.f32.mrb[12].mxu1 }
 0x121   :  { %v1212_v63 = vpop.f32.mrb[13].mxu0  ;;  %v1260_v1 = vpop.f32.mrb[13].mxu1 }
 0x122   :  { %v1095_v2 = vpack.c.bf16 %v750_v58, %v749_v56  ;;  %v1135_v3 = vpack.c.bf16 %v766_v59, %v765_v57  ;;  %v1213_v4 = vadd.f32 %v1212_v63, %v1211_v60  ;;  %v1261_v5 = vadd.f32 %v1260_v1, %v1259_v61  ;;  %v1214_v6 = vpop.f32.mrb[14].mxu0  ;;  %v1262_v7 = vpop.f32.mrb[14].mxu1  ;;  %v48_v60 = vld [vmem:[#allocation2 + $0x58] sm:$0xff] }
 0x123   :  { %v1215_v9 = vpop.f32.mrb[15].mxu0  ;;  %v1263_v11 = vpop.f32.mrb[15].mxu1 }
 0x124   :  { %1163 = vst [vmem:[#allocation5 + $0x10] sm:$0xff] %v1095_v2   ;;  %1171 = vst [vmem:[#allocation5 + $0x50] sm:$0xff] %v1135_v3   ;;  %v620_v12 = vadd.f32 %v1213_v4, %v43_v62  ;;  %v636_v13 = vadd.f32 %v1261_v5, %v59_v0  ;;  %v1216_v14 = vadd.f32 %v1215_v9, %v1214_v6 }
 0x125   :  { %v1264_v15 = vadd.f32 %v1263_v11, %v1262_v7 }
 0x126   :  { %652 = vst [vmem:[#allocation6 + $0x30] sm:$0xff] %v620_v12  ;;  %668 = vst [vmem:[#allocation6 + $0xb0] sm:$0xff] %v636_v13  ;;  %v621_v16 = vadd.f32 %v1216_v14, %v44_v8  ;;  %v751_v18 = vsub.f32 %v620_v12, %v43_v62  ;;  %v767_v19 = vsub.f32 %v636_v13, %v59_v0  ;;  %v64_v62 = vld [vmem:[#allocation2 + $0xd8] sm:$0xff]  ;;  %v49_v12 = vld [vmem:[#allocation2 + $0x60] sm:$0xff] }
 0x127   :  { %v637_v17 = vadd.f32 %v1264_v15, %v60_v10  ;;  %v65_v14 = vld [vmem:[#allocation2 + $0xe0] sm:$0xff] }
 0x128   :  { %653 = vst [vmem:[#allocation6 + $0x38] sm:$0xff] %v621_v16  ;;  %v752_v20 = vsub.f32 %v621_v16, %v44_v8  ;;  %v1217_v22 = vpop.f32.mrb[16].mxu0  ;;  %v1265_v23 = vpop.f32.mrb[16].mxu1 }
 0x129   :  { %669 = vst [vmem:[#allocation6 + $0xb8] sm:$0xff] %v637_v17  ;;  %v768_v21 = vsub.f32 %v637_v17, %v60_v10  ;;  %v1218_v25 = vpop.f32.mrb[17].mxu0  ;;  %v1266_v27 = vpop.f32.mrb[17].mxu1 }
 0x12a   :  { %v1100_v28 = vpack.c.bf16 %v752_v20, %v751_v18  ;;  %v1219_v30 = vadd.f32 %v1218_v25, %v1217_v22  ;;  %v1267_v31 = vadd.f32 %v1266_v27, %v1265_v23  ;;  %v1220_v32 = vpop.f32.mrb[18].mxu0  ;;  %v1268_v33 = vpop.f32.mrb[18].mxu1  ;;  %v50_v22 = vld [vmem:[#allocation2 + $0x68] sm:$0xff] }
 0x12b   :  { %v1140_v29 = vpack.c.bf16 %v768_v21, %v767_v19  ;;  %v1221_v35 = vpop.f32.mrb[19].mxu0  ;;  %v1269_v37 = vpop.f32.mrb[19].mxu1 }
 0x12c   :  { %1164 = vst [vmem:[#allocation5 + $0x18] sm:$0xff] %v1100_v28   ;;  %v622_v38 = vadd.f32 %v1219_v30, %v45_v24  ;;  %v638_v39 = vadd.f32 %v1267_v31, %v61_v26  ;;  %v1222_v40 = vadd.f32 %v1221_v35, %v1220_v32  ;;  %v1270_v41 = vadd.f32 %v1269_v37, %v1268_v33 }
 0x12d   :  { %1172 = vst [vmem:[#allocation5 + $0x58] sm:$0xff] %v1140_v29  }
 0x12e   :  { %654 = vst [vmem:[#allocation6 + $0x40] sm:$0xff] %v622_v38  ;;  %670 = vst [vmem:[#allocation6 + $0xc0] sm:$0xff] %v638_v39  ;;  %v623_v42 = vadd.f32 %v1222_v40, %v46_v34  ;;  %v639_v43 = vadd.f32 %v1270_v41, %v62_v36  ;;  %v753_v44 = vsub.f32 %v622_v38, %v45_v24  ;;  %v66_v24 = vld [vmem:[#allocation2 + $0xe8] sm:$0xff]  ;;  %v51_v38 = vld [vmem:[#allocation2 + $0x70] sm:$0xff] }
 0x12f   :  { %v769_v45 = vsub.f32 %v638_v39, %v61_v26  ;;  %v67_v40 = vld [vmem:[#allocation2 + $0xf0] sm:$0xff] }
 0x130   :  { %655 = vst [vmem:[#allocation6 + $0x48] sm:$0xff] %v623_v42  ;;  %v754_v46 = vsub.f32 %v623_v42, %v46_v34  ;;  %671 = vst [vmem:[#allocation6 + $0xc8] sm:$0xff] %v639_v43  ;;  %v770_v47 = vsub.f32 %v639_v43, %v62_v36  ;;  %v1223_v48 = vpop.f32.mrb[20].mxu0  ;;  %v1271_v49 = vpop.f32.mrb[20].mxu1 }
 0x131   :  { %v1224_v51 = vpop.f32.mrb[21].mxu0  ;;  %v1272_v53 = vpop.f32.mrb[21].mxu1 }
 0x132   :  { %v1105_v54 = vpack.c.bf16 %v754_v46, %v753_v44  ;;  %v1145_v55 = vpack.c.bf16 %v770_v47, %v769_v45  ;;  %v1225_v56 = vadd.f32 %v1224_v51, %v1223_v48  ;;  %v1273_v57 = vadd.f32 %v1272_v53, %v1271_v49  ;;  %v1226_v58 = vpop.f32.mrb[22].mxu0  ;;  %v1274_v59 = vpop.f32.mrb[22].mxu1  ;;  %v52_v48 = vld [vmem:[#allocation2 + $0x78] sm:$0xff] }
 0x133   :  { %v1227_v61 = vpop.f32.mrb[23].mxu0  ;;  %v1275_v63 = vpop.f32.mrb[23].mxu1 }
 0x134   :  { %1165 = vst [vmem:[#allocation5 + $0x20] sm:$0xff] %v1105_v54   ;;  %1173 = vst [vmem:[#allocation5 + $0x60] sm:$0xff] %v1145_v55   ;;  %v624_v0 = vadd.f32 %v1225_v56, %v47_v50  ;;  %v640_v1 = vadd.f32 %v1273_v57, %v63_v52  ;;  %v1228_v2 = vadd.f32 %v1227_v61, %v1226_v58 }
 0x135   :  { %v1276_v3 = vadd.f32 %v1275_v63, %v1274_v59 }
 0x136   :  { %656 = vst [vmem:[#allocation6 + $0x50] sm:$0xff] %v624_v0  ;;  %672 = vst [vmem:[#allocation6 + $0xd0] sm:$0xff] %v640_v1  ;;  %v625_v4 = vadd.f32 %v1228_v2, %v48_v60  ;;  %v755_v6 = vsub.f32 %v624_v0, %v47_v50  ;;  %v771_v7 = vsub.f32 %v640_v1, %v63_v52  ;;  %v68_v50 = vld [vmem:[#allocation2 + $0xf8] sm:$0xff] }
 0x137   :  { %v641_v5 = vadd.f32 %v1276_v3, %v64_v62 }
 0x138   :  { %657 = vst [vmem:[#allocation6 + $0x58] sm:$0xff] %v625_v4  ;;  %v756_v8 = vsub.f32 %v625_v4, %v48_v60  ;;  %v1229_v10 = vpop.f32.mrb[24].mxu0  ;;  %v1277_v11 = vpop.f32.mrb[24].mxu1 }
 0x139   :  { %673 = vst [vmem:[#allocation6 + $0xd8] sm:$0xff] %v641_v5  ;;  %v772_v9 = vsub.f32 %v641_v5, %v64_v62  ;;  %v1230_v13 = vpop.f32.mrb[25].mxu0  ;;  %v1278_v15 = vpop.f32.mrb[25].mxu1 }
 0x13a   :  { %v1110_v16 = vpack.c.bf16 %v756_v8, %v755_v6  ;;  %v1231_v18 = vadd.f32 %v1230_v13, %v1229_v10  ;;  %v1279_v19 = vadd.f32 %v1278_v15, %v1277_v11  ;;  %v1232_v20 = vpop.f32.mrb[26].mxu0  ;;  %v1280_v21 = vpop.f32.mrb[26].mxu1 }
 0x13b   :  { %v1150_v17 = vpack.c.bf16 %v772_v9, %v771_v7  ;;  %v1233_v23 = vpop.f32.mrb[27].mxu0  ;;  %v1281_v25 = vpop.f32.mrb[27].mxu1 }
 0x13c   :  { %1166 = vst [vmem:[#allocation5 + $0x28] sm:$0xff] %v1110_v16   ;;  %v626_v26 = vadd.f32 %v1231_v18, %v49_v12  ;;  %v642_v27 = vadd.f32 %v1279_v19, %v65_v14  ;;  %v1234_v28 = vadd.f32 %v1233_v23, %v1232_v20  ;;  %v1282_v29 = vadd.f32 %v1281_v25, %v1280_v21 }
 0x13d   :  { %1174 = vst [vmem:[#allocation5 + $0x68] sm:$0xff] %v1150_v17  }
 0x13e   :  { %658 = vst [vmem:[#allocation6 + $0x60] sm:$0xff] %v626_v26  ;;  %674 = vst [vmem:[#allocation6 + $0xe0] sm:$0xff] %v642_v27  ;;  %v627_v30 = vadd.f32 %v1234_v28, %v50_v22  ;;  %v643_v31 = vadd.f32 %v1282_v29, %v66_v24  ;;  %v757_v32 = vsub.f32 %v626_v26, %v49_v12 }
 0x13f   :  { %v773_v33 = vsub.f32 %v642_v27, %v65_v14 }
 0x140   :  { %659 = vst [vmem:[#allocation6 + $0x68] sm:$0xff] %v627_v30  ;;  %v758_v34 = vsub.f32 %v627_v30, %v50_v22  ;;  %675 = vst [vmem:[#allocation6 + $0xe8] sm:$0xff] %v643_v31  ;;  %v774_v35 = vsub.f32 %v643_v31, %v66_v24  ;;  %v1235_v36 = vpop.f32.mrb[28].mxu0  ;;  %v1283_v37 = vpop.f32.mrb[28].mxu1 }
 0x141   :  { %v1236_v39 = vpop.f32.mrb[29].mxu0  ;;  %v1284_v41 = vpop.f32.mrb[29].mxu1 }
 0x142   :  { %v1115_v42 = vpack.c.bf16 %v758_v34, %v757_v32  ;;  %v1155_v43 = vpack.c.bf16 %v774_v35, %v773_v33  ;;  %v1237_v44 = vadd.f32 %v1236_v39, %v1235_v36  ;;  %v1285_v45 = vadd.f32 %v1284_v41, %v1283_v37  ;;  %v1238_v46 = vpop.f32.mrb[30].mxu0  ;;  %v1286_v47 = vpop.f32.mrb[30].mxu1 }
 0x143   :  { %v1239_v49 = vpop.f32.mrb[31].mxu0  ;;  %v1287_v51 = vpop.f32.mrb[31].mxu1 }
 0x144   :  { %1167 = vst [vmem:[#allocation5 + $0x30] sm:$0xff] %v1115_v42   ;;  %1175 = vst [vmem:[#allocation5 + $0x70] sm:$0xff] %v1155_v43   ;;  %v628_v52 = vadd.f32 %v1237_v44, %v51_v38  ;;  %v644_v53 = vadd.f32 %v1285_v45, %v67_v40  ;;  %v1240_v54 = vadd.f32 %v1239_v49, %v1238_v46 }
 0x145   :  { %v1288_v55 = vadd.f32 %v1287_v51, %v1286_v47 }
 0x146   :  { %660 = vst [vmem:[#allocation6 + $0x70] sm:$0xff] %v628_v52  ;;  %676 = vst [vmem:[#allocation6 + $0xf0] sm:$0xff] %v644_v53  ;;  %v629_v56 = vadd.f32 %v1240_v54, %v52_v48  ;;  %v759_v58 = vsub.f32 %v628_v52, %v51_v38  ;;  %v775_v59 = vsub.f32 %v644_v53, %v67_v40 }
 0x147   :  { %v645_v57 = vadd.f32 %v1288_v55, %v68_v50 }
 0x148   :  { %661 = vst [vmem:[#allocation6 + $0x78] sm:$0xff] %v629_v56  ;;  %v760_v60 = vsub.f32 %v629_v56, %v52_v48 }
 0x149   :  { %677 = vst [vmem:[#allocation6 + $0xf8] sm:$0xff] %v645_v57  ;;  %v776_v61 = vsub.f32 %v645_v57, %v68_v50 }
 0x14a   :  { %1409 = shalt.err (!%p1406_p12)
}
 0x14b   :  { %s1410_s28 = scalar_lea.hbm %s1677_s4, 4096 }
 0x14c   :  { %p1411_p13 = scmp.ne.s32.totalorder %s1677_s4, %s1410_s28  ;;  %p1414_p0 = scmp.lt.u32.totalorder %s1410_s28, %s1677_s4 }
 0x14e   :  { %p1416_p1 = pnand %p1414_p0, %p1411_p13 }
 0x150   :  { %1419 = shalt.err (!%p1416_p1)
}
 0x151   :  { %960 = dma.vmem_to_hbm [thread:$0]  %s955_s1, 4096, %s1677_s4, [#allocation7], %s1449_s25, %s1449_s25, %s1450_s26   ;;  %v1120_v62 = vpack.c.bf16 %v760_v60, %v759_v58  ;;  %v1160_v63 = vpack.c.bf16 %v776_v61, %v775_v59 }
 0x152   :  { %s1420_s9 = scalar_lea.vmem %s1639_s22, 2048  ;;  %p1425_p3 = scmp.lt.s32.totalorder %s1639_s22, %s1639_s22 }
 0x153   :  { %1168 = vst [vmem:[#allocation5 + $0x38] sm:$0xff] %v1120_v62   ;;  %1176 = vst [vmem:[#allocation5 + $0x78] sm:$0xff] %v1160_v63   ;;  %p1421_p2 = scmp.ne.s32.totalorder %s1639_s22, %s1420_s9  ;;  %p1426_p4 = scmp.lt.s32.totalorder %s1420_s9, %s1420_s9 }
 0x155   :  { %p1427_p5 = por %p1426_p4, %p1425_p3 }
 0x157   :  { %p1428_p6 = pnand %p1427_p5, %p1421_p2 }
 0x159   :  { %1431 = shalt.err (!%p1428_p6)
}
 0x15a   :  { %s1432_s11 = scalar_lea.hbm %s1676_s3, 2048 }
 0x15b   :  { %p1433_p7 = scmp.ne.s32.totalorder %s1676_s3, %s1432_s11  ;;  %p1436_p8 = scmp.lt.u32.totalorder %s1432_s11, %s1676_s3 }
 0x15d   :  { %p1438_p9 = pnand %p1436_p8, %p1433_p7 }
 0x15f   :  { %1441 = shalt.err (!%p1438_p9)
}
 0x160   :  { %s1453_s26 = smov 64   ;;  %s1454_s14 = smov 4  }
 0x161   :  { %948 = dma.vmem_to_hbm [thread:$0]  %s1639_s22, 2048, %s1676_s3, [#allocation4], %s1453_s26, %s1453_s26, %s1454_s14  }
 0x162   :  { %1444 = dma.done.wait [#allocation4], 2048  }
 0x163   :  { %1445 = vsyncadd [#allocation4], 4294965248 }
 0x164   :  { %1446 = dma.done.wait [#allocation7], 4096  }
 0x165   :  { %1447 = vsyncadd [#allocation7], 4294963200 }
 0x166   :  { %967 = vsyncpa [#allocation3], 1 }
 0x167   :  { %968 = vsyncpa [#allocation4], 1 }
 0x168   :  { %969 = vsyncpa [#allocation7], 1 }

</bundles_post_ra>
